<compile_context>
chip_gen: v6e
topology: v6e:2x2x1
jax: 0.10.0
libtpu: 0.0.40
codegen_flags: <defaults>
</compile_context>

<pallas_src>
import functools

import jax
import jax.numpy as jnp
from jax.experimental import pallas as pl
from jax.experimental.pallas import tpu as pltpu


def _round_up(x: int, m: int) -> int:
    return ((x + m - 1) // m) * m


def _vmem_capacity_bytes() -> int:
    try:
        return int(pltpu.get_tpu_info().vmem_capacity_bytes)
    except Exception:
        return 64 << 20  # conservative default: v7x per-TensorCore VMEM


def _use_bf16_elementwise() -> bool:
    """bf16 tanh/bias-add on v6e/v7x (bf16 VPU/EUP); f32 on v5e and older."""
    try:
        kind = jax.devices()[0].device_kind.lower()
    except Exception:
        return False
    return not any(v in kind for v in ("v2", "v3", "v4", "v5"))


def _mlp_policy_kernel(n_layers, bf16_act, *refs):
    """refs = (obs, W1, b1, ..., W_out, b_out, std, eps, out).

    obs/eps/out are (TB, feat) batch tiles streamed over the grid; W (bf16),
    b (f32) and std (f32) are full arrays resident in VMEM across the grid.
    """
    obs_ref = refs[0]
    out_ref = refs[-1]
    eps_ref = refs[-2]
    std_ref = refs[-3]
    layer_refs = refs[1:-3]  # 2 * (n_layers + 1) refs: (W, b) pairs

    act_dtype = jnp.bfloat16 if bf16_act else jnp.float32
    h = obs_ref[...].astype(act_dtype)
    for i in range(n_layers + 1):
        w_ref = layer_refs[2 * i]      # bf16 (in, out), VMEM-resident
        b_ref = layer_refs[2 * i + 1]  # f32  (1, out),  VMEM-resident
        z = (
            jnp.dot(h.astype(jnp.bfloat16), w_ref[...],
                    preferred_element_type=jnp.float32)   # f32 MXU accumulate
            + b_ref[...]
        )
        if i < n_layers:
            h = jnp.tanh(z.astype(act_dtype))  # bf16 tanh on v6e/v7x, f32 on v5e
        else:
            h = z                              # mean stays f32

    # Normal(mean, std).rsample(): mean + std * eps  (std = exp(logstd), hoisted).
    out_ref[...] = h + std_ref[...] * eps_ref[...]


def prepare_params(layer_params, logstd):
    """One-time parameter preprocessing (reuse across forward calls).

    Re-run only after a parameter update: casts W to bf16, reshapes biases to
    (1, out), and folds exp(logstd) so the kernel never re-exponentiates.
    """
    ws = tuple(jnp.asarray(w, jnp.float32).astype(jnp.bfloat16) for w, _ in layer_params)
    bs = tuple(jnp.asarray(b, jnp.float32).reshape(1, -1) for _, b in layer_params)
    std = jnp.exp(jnp.asarray(logstd, jnp.float32).reshape(1, -1))
    return ws, bs, std


def _resident_spec(shape, single_buffer):
    """BlockSpec for a grid-invariant VMEM-resident operand."""
    idx = lambda i: (0, 0)
    buffered = getattr(pl, "Buffered", None)
    if single_buffer and buffered is not None:
        try:
            return pl.BlockSpec(shape, idx, pipeline_mode=buffered(1))
        except TypeError:
            pass
    return pl.BlockSpec(shape, idx)


def mlp_policy_forward(obs, prepared, eps, *, block_b: int = 4096):
    """MLPPolicySL.forward as a single batch-gridded Pallas call.

    obs:      (B, ob_dim) float32
    prepared: output of prepare_params(layer_params, logstd)
    eps:      (B, ac_dim) float32 standard-normal noise
    returns:  (B, ac_dim) float32 sampled actions
    """
    ws, bs, std = prepared
    n_layers = len(ws) - 1
    B, ob_dim = obs.shape
    ac_dim = std.shape[-1]
    obs = obs.astype(jnp.float32)
    eps = eps.astype(jnp.float32)
    bf16_act = _use_bf16_elementwise()

    lane = 128
    # Resident bytes (single-buffered): bf16 weights + f32 biases + f32 std,
    # accounted with their padded-in-VMEM footprints.
    resident_bytes = (
        sum(_round_up(w.shape[0], 16) * _round_up(w.shape[1], lane) * 2 for w in ws)
        + sum(8 * _round_up(b.shape[1], lane) * 4 for b in bs)
        + 8 * _round_up(ac_dim, lane) * 4
    )

    def stream_bytes(tb):
        # Streamed f32 tiles are lane-padded to 128 inside VMEM; obs + eps +
        # out, each double-buffered by the pipeline.
        return 2 * tb * (_round_up(ob_dim, lane) + 2 * _round_up(ac_dim, lane)) * 4

    # ~15% headroom below physical VMEM for compiler scratch (64 MiB on v7x,
    # 128 MiB on v5e/v6e — queried, not hard-coded).
    cap = int(0.85 * _vmem_capacity_bytes())

    # Batch tile: the whole batch when it fits in one block, else a multiple
    # of 8 sublanes; auto-shrink if the VMEM budget would be exceeded.
    TB = B if B <= block_b else max(8, (block_b // 8) * 8)
    while resident_bytes + stream_bytes(TB) > cap and TB > 8:
        TB = max(8, (TB // 2) // 8 * 8)

    grid = (pl.cdiv(B, TB),)

    vmem_limit = min(max(int(2 * (resident_bytes + stream_bytes(TB))) + (2 << 20),
                         16 << 20), cap)

    flops = int(2 * B * sum(w.shape[0] * w.shape[1] for w in ws))
    transcendentals = int(B * sum(w.shape[1] for w in ws[:-1]))  # tanh on hidden
    bytes_accessed = int(
        (obs.size + eps.size + B * ac_dim) * 4
        + sum(w.size * 2 for w in ws) + sum(b.size * 4 for b in bs) + std.size * 4
    )

    kernel = functools.partial(_mlp_policy_kernel, n_layers, bf16_act)

    def _call(single_buffer_residents):
        args = [obs]
        in_specs = [pl.BlockSpec((TB, ob_dim), lambda i: (i, 0))]
        for w, b in zip(ws, bs):
            args += [w, b]
            in_specs += [
                _resident_spec(w.shape, single_buffer_residents),
                _resident_spec(b.shape, single_buffer_residents),
            ]
        args += [std, eps]
        in_specs += [
            _resident_spec(std.shape, single_buffer_residents),
            pl.BlockSpec((TB, ac_dim), lambda i: (i, 0)),
        ]
        out_spec = pl.BlockSpec((TB, ac_dim), lambda i: (i, 0))

        return pl.pallas_call(
            kernel,
            out_shape=jax.ShapeDtypeStruct((B, ac_dim), jnp.float32),
            grid=grid,
            in_specs=in_specs,
            out_specs=out_spec,
            compiler_params=pltpu.CompilerParams(
                # Batch axis is embarrassingly parallel; on v7x this lets the
                # two TensorCores split the grid (each keeps its own tiny copy
                # of the resident weights).
                dimension_semantics=("parallel",),
                vmem_limit_bytes=vmem_limit,
            ),
            cost_estimate=pl.CostEstimate(
                flops=flops,
                transcendentals=transcendentals,
                bytes_accessed=bytes_accessed,
            ),
        )(*args)

    try:
        return _call(True)
    except Exception:
        # Fallback: default double-buffered residents if pl.Buffered(1) is
        # rejected by this jax build / lowering.
        return _call(False)


def init_params(key, ob_dim, ac_dim, n_layers, size):
    """Init mirroring nn.Linear defaults: U(-1/sqrt(fan_in), +1/sqrt(fan_in))."""
    params = []
    in_size = ob_dim
    dims = [size] * n_layers + [ac_dim]
    for out_size in dims:
        key, kw, kb = jax.random.split(key, 3)
        bound = 1.0 / jnp.sqrt(jnp.float32(in_size))
        w = jax.random.uniform(
            kw, (in_size, out_size), jnp.float32, minval=-bound, maxval=bound
        )
        b = jax.random.uniform(
            kb, (out_size,), jnp.float32, minval=-bound, maxval=bound
        )
        params.append((w, b))
        in_size = out_size
    logstd = jnp.zeros((ac_dim,), dtype=jnp.float32)  # nn.Parameter(torch.zeros)
    return params, logstd


def reference_forward_matched(obs, layer_params, logstd, eps, bf16_act):
    """Mirrors the kernel's dtype path (bf16 matmuls, f32 accumulate,
    bf16-or-f32 tanh)."""
    act_dtype = jnp.bfloat16 if bf16_act else jnp.float32
    h = obs.astype(act_dtype)
    n = len(layer_params) - 1
    for idx, (w, b) in enumerate(layer_params):
        z = jnp.dot(h.astype(jnp.bfloat16), w.astype(jnp.bfloat16),
                    preferred_element_type=jnp.float32) + b.reshape(1, -1)
        h = jnp.tanh(z.astype(act_dtype)) if idx < n else z
    return h + jnp.exp(logstd.reshape(1, -1)) * eps


def reference_forward_f32(obs, layer_params, logstd, eps):
    h = obs
    for w, b in layer_params[:-1]:
        h = jnp.tanh(h @ w + b.reshape(1, -1))
    w, b = layer_params[-1]
    mean = h @ w + b.reshape(1, -1)
    return mean + jnp.exp(logstd.reshape(1, -1)) * eps


if __name__ == "__main__":
    # Small shapes consistent with the module's forward.
    B, ob_dim, ac_dim, n_layers, size = 8, 16, 4, 2, 32

    key = jax.random.PRNGKey(0)
    key, k_obs, k_eps, k_par = jax.random.split(key, 4)

    obs = jax.random.normal(k_obs, (B, ob_dim), dtype=jnp.float32)
    eps = jax.random.normal(k_eps, (B, ac_dim), dtype=jnp.float32)
    layer_params, logstd = init_params(k_par, ob_dim, ac_dim, n_layers, size)
    prepared = prepare_params(layer_params, logstd)  # once per parameter update

    bf16_act = _use_bf16_elementwise()

    actions = jax.block_until_ready(mlp_policy_forward(obs, prepared, eps))
    assert actions.shape == (B, ac_dim)
    exp_matched = reference_forward_matched(obs, layer_params, logstd, eps, bf16_act)
    assert jnp.allclose(actions, exp_matched, atol=2e-2, rtol=2e-2)
    exp_f32 = reference_forward_f32(obs, layer_params, logstd, eps)
    assert jnp.allclose(actions, exp_f32, atol=5e-2, rtol=5e-2)

    # Larger batch exercising the ragged batch grid (200 = 3 * 64 + 8: three
    # full tiles + one partial tile, no batch padding).
    B2 = 200
    key, k_obs2, k_eps2 = jax.random.split(key, 3)
    obs2 = jax.random.normal(k_obs2, (B2, ob_dim), dtype=jnp.float32)
    eps2 = jax.random.normal(k_eps2, (B2, ac_dim), dtype=jnp.float32)
    actions2 = jax.block_until_ready(
        mlp_policy_forward(obs2, prepared, eps2, block_b=64))
    assert actions2.shape == (B2, ac_dim)
    exp2 = reference_forward_matched(obs2, layer_params, logstd, eps2, bf16_act)
    assert jnp.allclose(actions2, exp2, atol=2e-2, rtol=2e-2)

    print("KERNEL_OK")
</pallas_src>

<mosaic_0001>
module attributes {stable_mosaic.version = 11 : i64} {
  func.func @_mlp_policy_kernel(%arg0: i32, %arg1: memref<8x16xf32, #tpu.memory_space<vmem>>, %arg2: memref<16x32xbf16, #tpu.memory_space<vmem>>, %arg3: memref<1x32xf32, #tpu.memory_space<vmem>>, %arg4: memref<32x32xbf16, #tpu.memory_space<vmem>>, %arg5: memref<1x32xf32, #tpu.memory_space<vmem>>, %arg6: memref<32x4xbf16, #tpu.memory_space<vmem>>, %arg7: memref<1x4xf32, #tpu.memory_space<vmem>>, %arg8: memref<1x4xf32, #tpu.memory_space<vmem>>, %arg9: memref<8x4xf32, #tpu.memory_space<vmem>>, %arg10: memref<8x4xf32, #tpu.memory_space<vmem>>) attributes {dimension_semantics = [#tpu.dimension_semantics<parallel>], iteration_bounds = array<i64: 1>, scalar_prefetch = 0 : i64, scratch_operands = 0 : i64, tpu.core_type = #tpu.core_type<tc>, window_params = [{transform_indices = @transform_0, window_bounds = array<i64: 8, 16>}, {pipeline_mode = #tpu.pipeline_mode<synchronous>, transform_indices = @transform_1, window_bounds = array<i64: 16, 32>}, {pipeline_mode = #tpu.pipeline_mode<synchronous>, transform_indices = @transform_2, window_bounds = array<i64: 1, 32>}, {pipeline_mode = #tpu.pipeline_mode<synchronous>, transform_indices = @transform_3, window_bounds = array<i64: 32, 32>}, {pipeline_mode = #tpu.pipeline_mode<synchronous>, transform_indices = @transform_4, window_bounds = array<i64: 1, 32>}, {pipeline_mode = #tpu.pipeline_mode<synchronous>, transform_indices = @transform_5, window_bounds = array<i64: 32, 4>}, {pipeline_mode = #tpu.pipeline_mode<synchronous>, transform_indices = @transform_6, window_bounds = array<i64: 1, 4>}, {pipeline_mode = #tpu.pipeline_mode<synchronous>, transform_indices = @transform_7, window_bounds = array<i64: 1, 4>}, {transform_indices = @transform_8, window_bounds = array<i64: 8, 4>}, {transform_indices = @transform_9, window_bounds = array<i64: 8, 4>}]} {
    %c0 = arith.constant 0 : index
    %c0_0 = arith.constant 0 : index
    %0 = vector.load %arg1[%c0, %c0_0] : memref<8x16xf32, #tpu.memory_space<vmem>>, vector<8x16xf32>
    %1 = arith.truncf %0 : vector<8x16xf32> to vector<8x16xbf16>
    %c0_1 = arith.constant 0 : index
    %c0_2 = arith.constant 0 : index
    %2 = vector.load %arg2[%c0_1, %c0_2] : memref<16x32xbf16, #tpu.memory_space<vmem>>, vector<16x32xbf16>
    %cst = arith.constant dense<0.000000e+00> : vector<8x32xf32>
    %3 = tpu.matmul %1, %2, %cst {dimension_numbers = #tpu.dot_dimension_numbers<[1], [0], [0], [1], [0, 0, 1, 1], [], []>} : vector<8x16xbf16>, vector<16x32xbf16>, vector<8x32xf32> -> vector<8x32xf32>
    %c0_3 = arith.constant 0 : index
    %c0_4 = arith.constant 0 : index
    %4 = vector.load %arg3[%c0_3, %c0_4] : memref<1x32xf32, #tpu.memory_space<vmem>>, vector<1x32xf32>
    %5 = vector.broadcast %4 : vector<1x32xf32> to vector<8x32xf32>
    %6 = arith.addf %3, %5 : vector<8x32xf32>
    %7 = arith.truncf %6 : vector<8x32xf32> to vector<8x32xbf16>
    %8 = math.tanh %7 : vector<8x32xbf16>
    %c0_5 = arith.constant 0 : index
    %c0_6 = arith.constant 0 : index
    %9 = vector.load %arg4[%c0_5, %c0_6] : memref<32x32xbf16, #tpu.memory_space<vmem>>, vector<32x32xbf16>
    %cst_7 = arith.constant dense<0.000000e+00> : vector<8x32xf32>
    %10 = tpu.matmul %8, %9, %cst_7 {dimension_numbers = #tpu.dot_dimension_numbers<[1], [0], [0], [1], [0, 0, 1, 1], [], []>} : vector<8x32xbf16>, vector<32x32xbf16>, vector<8x32xf32> -> vector<8x32xf32>
    %c0_8 = arith.constant 0 : index
    %c0_9 = arith.constant 0 : index
    %11 = vector.load %arg5[%c0_8, %c0_9] : memref<1x32xf32, #tpu.memory_space<vmem>>, vector<1x32xf32>
    %12 = vector.broadcast %11 : vector<1x32xf32> to vector<8x32xf32>
    %13 = arith.addf %10, %12 : vector<8x32xf32>
    %14 = arith.truncf %13 : vector<8x32xf32> to vector<8x32xbf16>
    %15 = math.tanh %14 : vector<8x32xbf16>
    %c0_10 = arith.constant 0 : index
    %c0_11 = arith.constant 0 : index
    %16 = vector.load %arg6[%c0_10, %c0_11] : memref<32x4xbf16, #tpu.memory_space<vmem>>, vector<32x4xbf16>
    %cst_12 = arith.constant dense<0.000000e+00> : vector<8x4xf32>
    %17 = tpu.matmul %15, %16, %cst_12 {dimension_numbers = #tpu.dot_dimension_numbers<[1], [0], [0], [1], [0, 0, 1, 1], [], []>} : vector<8x32xbf16>, vector<32x4xbf16>, vector<8x4xf32> -> vector<8x4xf32>
    %c0_13 = arith.constant 0 : index
    %c0_14 = arith.constant 0 : index
    %18 = vector.load %arg7[%c0_13, %c0_14] : memref<1x4xf32, #tpu.memory_space<vmem>>, vector<1x4xf32>
    %19 = vector.broadcast %18 : vector<1x4xf32> to vector<8x4xf32>
    %20 = arith.addf %17, %19 : vector<8x4xf32>
    %c0_15 = arith.constant 0 : index
    %c0_16 = arith.constant 0 : index
    %21 = vector.load %arg8[%c0_15, %c0_16] : memref<1x4xf32, #tpu.memory_space<vmem>>, vector<1x4xf32>
    %c0_17 = arith.constant 0 : index
    %c0_18 = arith.constant 0 : index
    %22 = vector.load %arg9[%c0_17, %c0_18] : memref<8x4xf32, #tpu.memory_space<vmem>>, vector<8x4xf32>
    %23 = vector.broadcast %21 : vector<1x4xf32> to vector<8x4xf32>
    %24 = arith.mulf %23, %22 : vector<8x4xf32>
    %25 = arith.addf %20, %24 : vector<8x4xf32>
    %c0_19 = arith.constant 0 : index
    %c0_20 = arith.constant 0 : index
    %26 = vector.load %arg10[%c0_19, %c0_20] : memref<8x4xf32, #tpu.memory_space<vmem>>, vector<8x4xf32>
    tpu.vector_store %arg10[%c0_19, %c0_20], %25 {strides = array<i32>} : memref<8x4xf32, #tpu.memory_space<vmem>>, vector<8x4xf32>,
    return
  }
  func.func @transform_0(%arg0: i32) -> (i32, i32) {
    %c0_i32 = arith.constant 0 : i32
    %c0_i32_0 = arith.constant 0 : i32
    return %arg0, %c0_i32 : i32, i32
  }
  func.func @transform_1(%arg0: i32) -> (i32, i32) {
    %c0_i32 = arith.constant 0 : i32
    %c0_i32_0 = arith.constant 0 : i32
    %c0_i32_1 = arith.constant 0 : i32
    return %c0_i32, %c0_i32_0 : i32, i32
  }
  func.func @transform_2(%arg0: i32) -> (i32, i32) {
    %c0_i32 = arith.constant 0 : i32
    %c0_i32_0 = arith.constant 0 : i32
    %c0_i32_1 = arith.constant 0 : i32
    return %c0_i32, %c0_i32_0 : i32, i32
  }
  func.func @transform_3(%arg0: i32) -> (i32, i32) {
    %c0_i32 = arith.constant 0 : i32
    %c0_i32_0 = arith.constant 0 : i32
    %c0_i32_1 = arith.constant 0 : i32
    return %c0_i32, %c0_i32_0 : i32, i32
  }
  func.func @transform_4(%arg0: i32) -> (i32, i32) {
    %c0_i32 = arith.constant 0 : i32
    %c0_i32_0 = arith.constant 0 : i32
    %c0_i32_1 = arith.constant 0 : i32
    return %c0_i32, %c0_i32_0 : i32, i32
  }
  func.func @transform_5(%arg0: i32) -> (i32, i32) {
    %c0_i32 = arith.constant 0 : i32
    %c0_i32_0 = arith.constant 0 : i32
    %c0_i32_1 = arith.constant 0 : i32
    return %c0_i32, %c0_i32_0 : i32, i32
  }
  func.func @transform_6(%arg0: i32) -> (i32, i32) {
    %c0_i32 = arith.constant 0 : i32
    %c0_i32_0 = arith.constant 0 : i32
    %c0_i32_1 = arith.constant 0 : i32
    return %c0_i32, %c0_i32_0 : i32, i32
  }
  func.func @transform_7(%arg0: i32) -> (i32, i32) {
    %c0_i32 = arith.constant 0 : i32
    %c0_i32_0 = arith.constant 0 : i32
    %c0_i32_1 = arith.constant 0 : i32
    return %c0_i32, %c0_i32_0 : i32, i32
  }
  func.func @transform_8(%arg0: i32) -> (i32, i32) {
    %c0_i32 = arith.constant 0 : i32
    %c0_i32_0 = arith.constant 0 : i32
    return %arg0, %c0_i32 : i32, i32
  }
  func.func @transform_9(%arg0: i32) -> (i32, i32) {
    %c0_i32 = arith.constant 0 : i32
    %c0_i32_0 = arith.constant 0 : i32
    return %arg0, %c0_i32 : i32, i32
  }
}

module attributes {stable_mosaic.version = 11 : i64} {
  func.func @_mlp_policy_kernel(%arg0: i32, %arg1: memref<8x16xf32, #tpu.memory_space<vmem>>, %arg2: memref<16x32xbf16, #tpu.memory_space<vmem>>, %arg3: memref<1x32xf32, #tpu.memory_space<vmem>>, %arg4: memref<32x32xbf16, #tpu.memory_space<vmem>>, %arg5: memref<1x32xf32, #tpu.memory_space<vmem>>, %arg6: memref<32x4xbf16, #tpu.memory_space<vmem>>, %arg7: memref<1x4xf32, #tpu.memory_space<vmem>>, %arg8: memref<1x4xf32, #tpu.memory_space<vmem>>, %arg9: memref<8x4xf32, #tpu.memory_space<vmem>>, %arg10: memref<8x4xf32, #tpu.memory_space<vmem>>) attributes {dimension_semantics = [#tpu.dimension_semantics<parallel>], iteration_bounds = array<i64: 1>, scalar_prefetch = 0 : i64, scratch_operands = 0 : i64, tpu.core_type = #tpu.core_type<tc>, window_params = [{transform_indices = @transform_0, window_bounds = array<i64: 8, 16>}, {pipeline_mode = #tpu.pipeline_mode<synchronous>, transform_indices = @transform_1, window_bounds = array<i64: 16, 32>}, {pipeline_mode = #tpu.pipeline_mode<synchronous>, transform_indices = @transform_2, window_bounds = array<i64: 1, 32>}, {pipeline_mode = #tpu.pipeline_mode<synchronous>, transform_indices = @transform_3, window_bounds = array<i64: 32, 32>}, {pipeline_mode = #tpu.pipeline_mode<synchronous>, transform_indices = @transform_4, window_bounds = array<i64: 1, 32>}, {pipeline_mode = #tpu.pipeline_mode<synchronous>, transform_indices = @transform_5, window_bounds = array<i64: 32, 4>}, {pipeline_mode = #tpu.pipeline_mode<synchronous>, transform_indices = @transform_6, window_bounds = array<i64: 1, 4>}, {pipeline_mode = #tpu.pipeline_mode<synchronous>, transform_indices = @transform_7, window_bounds = array<i64: 1, 4>}, {transform_indices = @transform_8, window_bounds = array<i64: 8, 4>}, {transform_indices = @transform_9, window_bounds = array<i64: 8, 4>}]} {
    %c0 = arith.constant 0 : index
    %c0_0 = arith.constant 0 : index
    %0 = vector.load %arg1[%c0, %c0_0] : memref<8x16xf32, #tpu.memory_space<vmem>>, vector<8x16xf32>
    %1 = arith.truncf %0 : vector<8x16xf32> to vector<8x16xbf16>
    %c0_1 = arith.constant 0 : index
    %c0_2 = arith.constant 0 : index
    %2 = vector.load %arg2[%c0_1, %c0_2] : memref<16x32xbf16, #tpu.memory_space<vmem>>, vector<16x32xbf16>
    %cst = arith.constant dense<0.000000e+00> : vector<8x32xf32>
    %3 = tpu.matmul %1, %2, %cst {dimension_numbers = #tpu.dot_dimension_numbers<[1], [0], [0], [1], [0, 0, 1, 1], [], []>} : vector<8x16xbf16>, vector<16x32xbf16>, vector<8x32xf32> -> vector<8x32xf32>
    %c0_3 = arith.constant 0 : index
    %c0_4 = arith.constant 0 : index
    %4 = vector.load %arg3[%c0_3, %c0_4] : memref<1x32xf32, #tpu.memory_space<vmem>>, vector<1x32xf32>
    %5 = vector.broadcast %4 : vector<1x32xf32> to vector<8x32xf32>
    %6 = arith.addf %3, %5 : vector<8x32xf32>
    %7 = arith.truncf %6 : vector<8x32xf32> to vector<8x32xbf16>
    %8 = math.tanh %7 : vector<8x32xbf16>
    %c0_5 = arith.constant 0 : index
    %c0_6 = arith.constant 0 : index
    %9 = vector.load %arg4[%c0_5, %c0_6] : memref<32x32xbf16, #tpu.memory_space<vmem>>, vector<32x32xbf16>
    %cst_7 = arith.constant dense<0.000000e+00> : vector<8x32xf32>
    %10 = tpu.matmul %8, %9, %cst_7 {dimension_numbers = #tpu.dot_dimension_numbers<[1], [0], [0], [1], [0, 0, 1, 1], [], []>} : vector<8x32xbf16>, vector<32x32xbf16>, vector<8x32xf32> -> vector<8x32xf32>
    %c0_8 = arith.constant 0 : index
    %c0_9 = arith.constant 0 : index
    %11 = vector.load %arg5[%c0_8, %c0_9] : memref<1x32xf32, #tpu.memory_space<vmem>>, vector<1x32xf32>
    %12 = vector.broadcast %11 : vector<1x32xf32> to vector<8x32xf32>
    %13 = arith.addf %10, %12 : vector<8x32xf32>
    %14 = arith.truncf %13 : vector<8x32xf32> to vector<8x32xbf16>
    %15 = math.tanh %14 : vector<8x32xbf16>
    %c0_10 = arith.constant 0 : index
    %c0_11 = arith.constant 0 : index
    %16 = vector.load %arg6[%c0_10, %c0_11] : memref<32x4xbf16, #tpu.memory_space<vmem>>, vector<32x4xbf16>
    %cst_12 = arith.constant dense<0.000000e+00> : vector<8x4xf32>
    %17 = tpu.matmul %15, %16, %cst_12 {dimension_numbers = #tpu.dot_dimension_numbers<[1], [0], [0], [1], [0, 0, 1, 1], [], []>} : vector<8x32xbf16>, vector<32x4xbf16>, vector<8x4xf32> -> vector<8x4xf32>
    %c0_13 = arith.constant 0 : index
    %c0_14 = arith.constant 0 : index
    %18 = vector.load %arg7[%c0_13, %c0_14] : memref<1x4xf32, #tpu.memory_space<vmem>>, vector<1x4xf32>
    %19 = vector.broadcast %18 : vector<1x4xf32> to vector<8x4xf32>
    %20 = arith.addf %17, %19 : vector<8x4xf32>
    %c0_15 = arith.constant 0 : index
    %c0_16 = arith.constant 0 : index
    %21 = vector.load %arg8[%c0_15, %c0_16] : memref<1x4xf32, #tpu.memory_space<vmem>>, vector<1x4xf32>
    %c0_17 = arith.constant 0 : index
    %c0_18 = arith.constant 0 : index
    %22 = vector.load %arg9[%c0_17, %c0_18] : memref<8x4xf32, #tpu.memory_space<vmem>>, vector<8x4xf32>
    %23 = vector.broadcast %21 : vector<1x4xf32> to vector<8x4xf32>
    %24 = arith.mulf %23, %22 : vector<8x4xf32>
    %25 = arith.addf %20, %24 : vector<8x4xf32>
    %c0_19 = arith.constant 0 : index
    %c0_20 = arith.constant 0 : index
    %26 = vector.load %arg10[%c0_19, %c0_20] : memref<8x4xf32, #tpu.memory_space<vmem>>, vector<8x4xf32>
    tpu.vector_store %arg10[%c0_19, %c0_20], %25 {strides = array<i32>} : memref<8x4xf32, #tpu.memory_space<vmem>>, vector<8x4xf32>,
    return
  }
  func.func @transform_0(%arg0: i32) -> (i32, i32) {
    %c0_i32 = arith.constant 0 : i32
    %c0_i32_0 = arith.constant 0 : i32
    return %arg0, %c0_i32 : i32, i32
  }
  func.func @transform_1(%arg0: i32) -> (i32, i32) {
    %c0_i32 = arith.constant 0 : i32
    %c0_i32_0 = arith.constant 0 : i32
    %c0_i32_1 = arith.constant 0 : i32
    return %c0_i32, %c0_i32_0 : i32, i32
  }
  func.func @transform_2(%arg0: i32) -> (i32, i32) {
    %c0_i32 = arith.constant 0 : i32
    %c0_i32_0 = arith.constant 0 : i32
    %c0_i32_1 = arith.constant 0 : i32
    return %c0_i32, %c0_i32_0 : i32, i32
  }
  func.func @transform_3(%arg0: i32) -> (i32, i32) {
    %c0_i32 = arith.constant 0 : i32
    %c0_i32_0 = arith.constant 0 : i32
    %c0_i32_1 = arith.constant 0 : i32
    return %c0_i32, %c0_i32_0 : i32, i32
  }
  func.func @transform_4(%arg0: i32) -> (i32, i32) {
    %c0_i32 = arith.constant 0 : i32
    %c0_i32_0 = arith.constant 0 : i32
    %c0_i32_1 = arith.constant 0 : i32
    return %c0_i32, %c0_i32_0 : i32, i32
  }
  func.func @transform_5(%arg0: i32) -> (i32, i32) {
    %c0_i32 = arith.constant 0 : i32
    %c0_i32_0 = arith.constant 0 : i32
    %c0_i32_1 = arith.constant 0 : i32
    return %c0_i32, %c0_i32_0 : i32, i32
  }
  func.func @transform_6(%arg0: i32) -> (i32, i32) {
    %c0_i32 = arith.constant 0 : i32
    %c0_i32_0 = arith.constant 0 : i32
    %c0_i32_1 = arith.constant 0 : i32
    return %c0_i32, %c0_i32_0 : i32, i32
  }
  func.func @transform_7(%arg0: i32) -> (i32, i32) {
    %c0_i32 = arith.constant 0 : i32
    %c0_i32_0 = arith.constant 0 : i32
    %c0_i32_1 = arith.constant 0 : i32
    return %c0_i32, %c0_i32_0 : i32, i32
  }
  func.func @transform_8(%arg0: i32) -> (i32, i32) {
    %c0_i32 = arith.constant 0 : i32
    %c0_i32_0 = arith.constant 0 : i32
    return %arg0, %c0_i32 : i32, i32
  }
  func.func @transform_9(%arg0: i32) -> (i32, i32) {
    %c0_i32 = arith.constant 0 : i32
    %c0_i32_0 = arith.constant 0 : i32
    return %arg0, %c0_i32 : i32, i32
  }
}

</mosaic_0001>

<bundles_post_ra>
// kernel: tpu_custom_call.1
= control target key start
LH: loop header
LB: loop body
LE: loop exit
PB: predicated region body
PF: predicated region fallthrough
CT: control target
= control target key end

     0   :  { %14 = vsyncpa [#allocation3], 0  ;;  %s340_s30 = smov [#allocation2]   ;;  %s433_s0 = inlined_call_operand.vmem [shape: f32[8,16], index: 0, kind: input, shape index: {}]   ;;  %s434_s1 = inlined_call_operand.hbm [shape: bf16[16,32], index: 1, kind: input, shape index: {}]   ;;  %s435_s2 = inlined_call_operand.vmem [shape: f32[1,32], index: 2, kind: input, shape index: {}]   ;;  %s436_s3 = inlined_call_operand.vmem [shape: bf16[32,32], index: 3, kind: input, shape index: {}]   ;;  %s437_s4 = inlined_call_operand.vmem [shape: f32[1,32], index: 4, kind: input, shape index: {}]   ;;  %s438_s5 = inlined_call_operand.vmem [shape: bf16[32,4], index: 5, kind: input, shape index: {}]   ;;  %s439_s6 = inlined_call_operand.vmem [shape: f32[1,4], index: 6, kind: input, shape index: {}]   ;;  %s440_s7 = inlined_call_operand.vmem [shape: f32[1,4], index: 7, kind: input, shape index: {}]   ;;  %s441_s8 = inlined_call_operand.vmem [shape: f32[8,4], index: 8, kind: input, shape index: {}]   ;;  %s442_s9 = inlined_call_operand.vmem [shape: f32[8,4], index: 9, kind: output, shape index: {}]  }
   0x1   :  { %s22_s10 = sshll.u32 %s340_s30, 4  ;;  %s23_s10 = int_to_ptr.vmem [resolvable:$true] %s22_s10 }
   0x2   :  { %s326_s11 = scalar_lea.vmem %s23_s10, 128  ;;  %p331_p1 = scmp.lt.s32.totalorder %s23_s10, %s23_s10 }
   0x3   :  { %p327_p0 = scmp.ne.s32.totalorder %s23_s10, %s326_s11  ;;  %p332_p2 = scmp.lt.s32.totalorder %s326_s11, %s326_s11 }
   0x5   :  { %p333_p3 = por %p332_p2, %p331_p1 }
   0x7   :  { %p334_p4 = pnand %p333_p3, %p327_p0 }
   0x9   :  { %337 = shalt.err (!%p334_p4)
}
   0xa   :  { %s341_s12 = smov 64   ;;  %s342_s13 = smov 4  }
   0xb   :  { %28 = dma.hbm_to_vmem [thread:$0]  %s434_s1, 128, %s23_s10, [#allocation3], %s341_s12, %s341_s12, %s342_s13  }
   0xc   :  { %338 = dma.done.wait [#allocation3], 128  }
   0xd   :  { %339 = vsyncadd [#allocation3], 4294967168  ;;  %v343_v0 = vmov 0.0   ;;  %vm344_vm0 = vmmov 0   ;;  %v309_v1 = vld [vmem:[#allocation2] sm:$0xff]   ;;  %vm64_vm1 = vcmask 130048  }
   0xe   :  { %282 = vmatprep.subr.bf16.mxu0 %v343_v0  ;;  %284 = vmatprep.mubr.msk.bf16.mxu0 %vm344_vm0, %v343_v0  ;;  %v47_v2 = vld [vmem:[%s433_s0] sm:$0xff]  ;;  %v310_v4 = vld [vmem:[%s436_s3 + $0x8] sm:$0xff]   ;;  %vm133_vm2 = vcmask 261120   ;;  %vm255_vm3 = vcmask 31744  }
   0xf   :  { %288 = vmatprep.subr.bf16.mxu1 %v343_v0  ;;  %292 = vmatprep.mubr.msk.bf16.mxu1 %vm344_vm0, %v343_v0  ;;  %v48_v3 = vpack.c.bf16 %v47_v2, %v47_v2  ;;  %v311_v5 = vld [vmem:[%s436_s3] sm:$0xff]   ;;  %v312_v14 = vld [vmem:[%s438_s5 + $0x8] sm:$0xff]  }
  0x10   :  { %283 = vmatpush3.bf16.msra.mxu0 %v309_v1  ;;  %289 = vmatpush3.bf16.msra.mxu1 %v310_v4  ;;  %v262_v6 = vld [vmem:[%s435_s2] ss:$0 sm:$0xff] }
  0x11   :  { %296 = vmatprep.subr.bf16.mxu0 %v343_v0  ;;  %290 = vmatprep.subr.bf16.mxu1 %v343_v0  ;;  %v313_v15 = vld [vmem:[%s438_s5] sm:$0xff]  }
  0x12   :  { %v265_v16 = vld [vmem:[%s437_s4] ss:$0 sm:$0xff] }
  0x13   :  { %285 = vmatmul.mubr.msk.bf16.vlgmr.msra.gmra.mxu0 %vm64_vm1, %v48_v3  ;;  %v273_v24 = vld [vmem:[%s440_s7] ss:$0 sm:$0xff] }
  0x14   :  { %300 = vmatprep.mubr.msk.bf16.mxu0 %vm344_vm0, %v343_v0  ;;  %291 = vmatpush3.bf16.msra.mxu1 %v311_v5  ;;  %v246_v25 = vld [vmem:[%s441_s8] sm:$0xff] }
  0x15   :  { %297 = vmatpush3.bf16.msra.mxu0 %v312_v14  ;;  %v269_v26 = vld [vmem:[%s439_s6] ss:$0 sm:$0xff]  ;;  %v253_v27 = vmul.f32 %v273_v24, %v246_v25 }
  0x16   :  { %298 = vmatprep.subr.bf16.mxu0 %v343_v0 }
  0x19   :  { %299 = vmatpush3.bf16.msra.mxu0 %v313_v15 }
  0xd3   :  { %v102_v7 = vpop.f32.mrf.mxu0 }
  0xd4   :  { %v103_v8 = vadd.f32 %v262_v6, %v102_v7 }
  0xd5   :  { %v286_v9 = vpop.f32.mrf.mxu0 }
  0xd6   :  { %v108_v10 = vpack.c.bf16 %v103_v8, %v103_v8 }
  0xd7   :  { %v105_v11 = vpop.f32.mrf.mxu0 }
  0xd8   :  { %314 = vtanh.bf16 %v108_v10 }
  0xd9   :  { %v287_v12 = vpop.f32.mrf.mxu0 }
  0xe6   :  { %v315_v13 = vpop.eup %314 }
  0xe7   :  { %293 = vmatmul.mubr.msk.bf16.vlgmr.msra.gmra.mxu1 %vm133_vm2, %v315_v13 }
 0x1a7   :  { %v171_v17 = vpop.f32.mrf.mxu1 }
 0x1a8   :  { %v172_v18 = vadd.f32 %v265_v16, %v171_v17 }
 0x1a9   :  { %v294_v19 = vpop.f32.mrf.mxu1 }
 0x1aa   :  { %v177_v20 = vpack.c.bf16 %v172_v18, %v172_v18 }
 0x1ab   :  { %v174_v21 = vpop.f32.mrf.mxu1 }
 0x1ac   :  { %316 = vtanh.bf16 %v177_v20 }
 0x1ad   :  { %v295_v22 = vpop.f32.mrf.mxu1 }
 0x1ba   :  { %v317_v23 = vpop.eup %316 }
 0x1bb   :  { %301 = vmatmul.mubr.msk.bf16.vlgmr.msra.gmra.mxu0 %vm133_vm2, %v317_v23 }
 0x27b   :  { %v239_v28 = vpop.f32.mrf.mxu0 }
 0x27c   :  { %v240_v29 = vadd.f32 %v269_v26, %v239_v28 }
 0x27d   :  { %v302_v30 = vpop.f32.mrf.mxu0 }
 0x27e   :  { %v254_v31 = vadd.f32 %v253_v27, %v240_v29 }
 0x27f   :  { %v242_v32 = vpop.f32.mrf.mxu0 }
 0x280   :  { %256 = vst.msk [vmem:[%s442_s9] sm:$0xff] %vm255_vm3, %v254_v31 }
 0x281   :  { %v303_v33 = vpop.f32.mrf.mxu0 }
 0x282   :  { %261 = vsyncpa [#allocation3], 1 }

// kernel: tpu_custom_call.1
= control target key start
LH: loop header
LB: loop body
LE: loop exit
PB: predicated region body
PF: predicated region fallthrough
CT: control target
= control target key end

     0   :  { %14 = vsyncpa [#allocation3], 0  ;;  %s340_s30 = smov [#allocation2]   ;;  %s433_s0 = inlined_call_operand.vmem [shape: f32[8,16], index: 0, kind: input, shape index: {}]   ;;  %s434_s1 = inlined_call_operand.hbm [shape: bf16[16,32], index: 1, kind: input, shape index: {}]   ;;  %s435_s2 = inlined_call_operand.vmem [shape: f32[1,32], index: 2, kind: input, shape index: {}]   ;;  %s436_s3 = inlined_call_operand.vmem [shape: bf16[32,32], index: 3, kind: input, shape index: {}]   ;;  %s437_s4 = inlined_call_operand.vmem [shape: f32[1,32], index: 4, kind: input, shape index: {}]   ;;  %s438_s5 = inlined_call_operand.vmem [shape: bf16[32,4], index: 5, kind: input, shape index: {}]   ;;  %s439_s6 = inlined_call_operand.vmem [shape: f32[1,4], index: 6, kind: input, shape index: {}]   ;;  %s440_s7 = inlined_call_operand.vmem [shape: f32[1,4], index: 7, kind: input, shape index: {}]   ;;  %s441_s8 = inlined_call_operand.vmem [shape: f32[8,4], index: 8, kind: input, shape index: {}]   ;;  %s442_s9 = inlined_call_operand.vmem [shape: f32[8,4], index: 9, kind: output, shape index: {}]  }
   0x1   :  { %s22_s10 = sshll.u32 %s340_s30, 4  ;;  %s23_s10 = int_to_ptr.vmem [resolvable:$true] %s22_s10 }
   0x2   :  { %s326_s11 = scalar_lea.vmem %s23_s10, 128  ;;  %p331_p1 = scmp.lt.s32.totalorder %s23_s10, %s23_s10 }
   0x3   :  { %p327_p0 = scmp.ne.s32.totalorder %s23_s10, %s326_s11  ;;  %p332_p2 = scmp.lt.s32.totalorder %s326_s11, %s326_s11 }
   0x5   :  { %p333_p3 = por %p332_p2, %p331_p1 }
   0x7   :  { %p334_p4 = pnand %p333_p3, %p327_p0 }
   0x9   :  { %337 = shalt.err (!%p334_p4)
}
   0xa   :  { %s341_s12 = smov 64   ;;  %s342_s13 = smov 4  }
   0xb   :  { %28 = dma.hbm_to_vmem [thread:$0]  %s434_s1, 128, %s23_s10, [#allocation3], %s341_s12, %s341_s12, %s342_s13  }
   0xc   :  { %338 = dma.done.wait [#allocation3], 128  }
   0xd   :  { %339 = vsyncadd [#allocation3], 4294967168  ;;  %v343_v0 = vmov 0.0   ;;  %vm344_vm0 = vmmov 0   ;;  %v309_v1 = vld [vmem:[#allocation2] sm:$0xff]   ;;  %vm64_vm1 = vcmask 130048  }
   0xe   :  { %282 = vmatprep.subr.bf16.mxu0 %v343_v0  ;;  %284 = vmatprep.mubr.msk.bf16.mxu0 %vm344_vm0, %v343_v0  ;;  %v47_v2 = vld [vmem:[%s433_s0] sm:$0xff]  ;;  %v310_v4 = vld [vmem:[%s436_s3 + $0x8] sm:$0xff]   ;;  %vm133_vm2 = vcmask 261120   ;;  %vm255_vm3 = vcmask 31744  }
   0xf   :  { %288 = vmatprep.subr.bf16.mxu1 %v343_v0  ;;  %292 = vmatprep.mubr.msk.bf16.mxu1 %vm344_vm0, %v343_v0  ;;  %v48_v3 = vpack.c.bf16 %v47_v2, %v47_v2  ;;  %v311_v5 = vld [vmem:[%s436_s3] sm:$0xff]   ;;  %v312_v14 = vld [vmem:[%s438_s5 + $0x8] sm:$0xff]  }
  0x10   :  { %283 = vmatpush3.bf16.msra.mxu0 %v309_v1  ;;  %289 = vmatpush3.bf16.msra.mxu1 %v310_v4  ;;  %v262_v6 = vld [vmem:[%s435_s2] ss:$0 sm:$0xff] }
  0x11   :  { %296 = vmatprep.subr.bf16.mxu0 %v343_v0  ;;  %290 = vmatprep.subr.bf16.mxu1 %v343_v0  ;;  %v313_v15 = vld [vmem:[%s438_s5] sm:$0xff]  }
  0x12   :  { %v265_v16 = vld [vmem:[%s437_s4] ss:$0 sm:$0xff] }
  0x13   :  { %285 = vmatmul.mubr.msk.bf16.vlgmr.msra.gmra.mxu0 %vm64_vm1, %v48_v3  ;;  %v273_v24 = vld [vmem:[%s440_s7] ss:$0 sm:$0xff] }
  0x14   :  { %300 = vmatprep.mubr.msk.bf16.mxu0 %vm344_vm0, %v343_v0  ;;  %291 = vmatpush3.bf16.msra.mxu1 %v311_v5  ;;  %v246_v25 = vld [vmem:[%s441_s8] sm:$0xff] }
  0x15   :  { %297 = vmatpush3.bf16.msra.mxu0 %v312_v14  ;;  %v269_v26 = vld [vmem:[%s439_s6] ss:$0 sm:$0xff]  ;;  %v253_v27 = vmul.f32 %v273_v24, %v246_v25 }
  0x16   :  { %298 = vmatprep.subr.bf16.mxu0 %v343_v0 }
  0x19   :  { %299 = vmatpush3.bf16.msra.mxu0 %v313_v15 }
  0xd3   :  { %v102_v7 = vpop.f32.mrf.mxu0 }
  0xd4   :  { %v103_v8 = vadd.f32 %v262_v6, %v102_v7 }
  0xd5   :  { %v286_v9 = vpop.f32.mrf.mxu0 }
  0xd6   :  { %v108_v10 = vpack.c.bf16 %v103_v8, %v103_v8 }
  0xd7   :  { %v105_v11 = vpop.f32.mrf.mxu0 }
  0xd8   :  { %314 = vtanh.bf16 %v108_v10 }
  0xd9   :  { %v287_v12 = vpop.f32.mrf.mxu0 }
  0xe6   :  { %v315_v13 = vpop.eup %314 }
  0xe7   :  { %293 = vmatmul.mubr.msk.bf16.vlgmr.msra.gmra.mxu1 %vm133_vm2, %v315_v13 }
 0x1a7   :  { %v171_v17 = vpop.f32.mrf.mxu1 }
 0x1a8   :  { %v172_v18 = vadd.f32 %v265_v16, %v171_v17 }
 0x1a9   :  { %v294_v19 = vpop.f32.mrf.mxu1 }
 0x1aa   :  { %v177_v20 = vpack.c.bf16 %v172_v18, %v172_v18 }
 0x1ab   :  { %v174_v21 = vpop.f32.mrf.mxu1 }
 0x1ac   :  { %316 = vtanh.bf16 %v177_v20 }
 0x1ad   :  { %v295_v22 = vpop.f32.mrf.mxu1 }
 0x1ba   :  { %v317_v23 = vpop.eup %316 }
 0x1bb   :  { %301 = vmatmul.mubr.msk.bf16.vlgmr.msra.gmra.mxu0 %vm133_vm2, %v317_v23 }
 0x27b   :  { %v239_v28 = vpop.f32.mrf.mxu0 }
 0x27c   :  { %v240_v29 = vadd.f32 %v269_v26, %v239_v28 }
 0x27d   :  { %v302_v30 = vpop.f32.mrf.mxu0 }
 0x27e   :  { %v254_v31 = vadd.f32 %v253_v27, %v240_v29 }
 0x27f   :  { %v242_v32 = vpop.f32.mrf.mxu0 }
 0x280   :  { %256 = vst.msk [vmem:[%s442_s9] sm:$0xff] %vm255_vm3, %v254_v31 }
 0x281   :  { %v303_v33 = vpop.f32.mrf.mxu0 }
 0x282   :  { %261 = vsyncpa [#allocation3], 1 }

</bundles_post_ra>
